<compile_context>
chip_gen: v6e
topology: v6e:2x2x1
jax: 0.10.0
libtpu: 0.0.40
codegen_flags: <defaults>
</compile_context>

<pallas_src>
import functools

import jax
import jax.numpy as jnp
from jax.experimental import pallas as pl
from jax.experimental.pallas import tpu as pltpu


def _round_up(x, m):
    return ((x + m - 1) // m) * m


def _smape_kernel(p_ref, a_ref, o_ref, acc_ref, *, batch, seq_len, bm, tt,
                  mask_rows, mask_cols):
    j = pl.program_id(1)          # seq (reduction) axis, innermost

    @pl.when(j == 0)
    def _():
        acc_ref[...] = jnp.zeros_like(acc_ref)

    p = p_ref[...].astype(jnp.float32)
    a = a_ref[...].astype(jnp.float32)
    num = jnp.abs(p - a)
    den = jnp.abs(p) + jnp.abs(a)

    # Tail masking for partial edge tiles (compile-time decision).
    mask = None
    if mask_rows:
        i = pl.program_id(0)
        rows = jax.lax.broadcasted_iota(jnp.int32, (bm, tt), 0) + i * bm
        mask = rows < batch
    if mask_cols:
        cols = jax.lax.broadcasted_iota(jnp.int32, (bm, tt), 1) + j * tt
        cmask = cols < seq_len
        mask = cmask if mask is None else jnp.logical_and(mask, cmask)
    if mask is not None:
        num = jnp.where(mask, num, 0.0)
        den = jnp.where(mask, den, 1.0)

    # Pure VPU elementwise accumulate every grid step.
    acc_ref[...] += num / den

    # One cross-lane reduce per batch block, written lane-dense.
    @pl.when(j == pl.num_programs(1) - 1)
    def _():
        o_ref[...] = jnp.broadcast_to(jnp.sum(acc_ref[...]), o_ref.shape)


def smape_loss(predictions, actuals, *, batch_tile=512, seq_tile=1024):
    """SMAPE loss; abs / div / reduction done inside the Pallas kernel."""
    assert predictions.shape == actuals.shape
    assert predictions.ndim == 2
    B, T = predictions.shape

    # Tile sizes: clamp to the (rounded-up) array extents, keep (8, 128)
    # alignment for the block shape.
    bm = _round_up(min(batch_tile, B), 8)
    tt = _round_up(min(seq_tile, T), 128)
    nb = pl.cdiv(B, bm)
    nt = pl.cdiv(T, tt)

    kernel = functools.partial(
        _smape_kernel,
        batch=B, seq_len=T, bm=bm, tt=tt,
        mask_rows=(B % bm) != 0, mask_cols=(T % tt) != 0,
    )

    partials = pl.pallas_call(
        kernel,
        out_shape=jax.ShapeDtypeStruct((nb, 8, 128), jnp.float32),
        grid_spec=pltpu.PrefetchScalarGridSpec(
            num_scalar_prefetch=0,
            grid=(nb, nt),
            in_specs=[
                pl.BlockSpec((bm, tt), lambda i, j: (i, j)),
                pl.BlockSpec((bm, tt), lambda i, j: (i, j)),
            ],
            out_specs=pl.BlockSpec((1, 8, 128), lambda i, j: (i, 0, 0)),
            scratch_shapes=[pltpu.VMEM((bm, tt), jnp.float32)],
        ),
        compiler_params=pltpu.CompilerParams(
            dimension_semantics=("parallel", "arbitrary"),
            vmem_limit_bytes=32 * 1024 * 1024,
        ),
    )(predictions, actuals)

    # Final normalization in the wrapper:  mean(2 * sumf / T) = 2*sum/(B*T).
    total = jnp.sum(partials[:, 0, 0])
    return 2.0 * total / jnp.float32(B * T)


def smape_loss_ref(predictions, actuals):
    p = predictions.astype(jnp.float32)
    a = actuals.astype(jnp.float32)
    T = p.shape[1]
    sumf = jnp.sum(jnp.abs(p - a) / (jnp.abs(p) + jnp.abs(a)), axis=1)
    return jnp.mean(2.0 * sumf / T)


if __name__ == "__main__":
    key = jax.random.PRNGKey(0)
    kp, ka = jax.random.split(key)

    # Small, aligned case (batch=8, seq=256). Keep values away from the (0,0)
    # singularity, like real forecast data.
    B, T = 8, 256
    predictions = jax.random.uniform(kp, (B, T), dtype=jnp.float32) + 0.5
    actuals = jax.random.uniform(ka, (B, T), dtype=jnp.float32) + 0.5
    loss = jax.block_until_ready(smape_loss(predictions, actuals))
    ref = jax.block_until_ready(smape_loss_ref(predictions, actuals))
    assert jnp.allclose(loss, ref, rtol=1e-5, atol=1e-6), (loss, ref)

    # Unaligned case exercising the tail-masking path (batch=10, seq=300).
    kp2, ka2 = jax.random.split(jax.random.PRNGKey(1))
    B2, T2 = 10, 300
    p2 = jax.random.uniform(kp2, (B2, T2), dtype=jnp.float32) + 0.5
    a2 = jax.random.uniform(ka2, (B2, T2), dtype=jnp.float32) + 0.5
    loss2 = jax.block_until_ready(smape_loss(p2, a2))
    ref2 = jax.block_until_ready(smape_loss_ref(p2, a2))
    assert jnp.allclose(loss2, ref2, rtol=1e-5, atol=1e-6), (loss2, ref2)

    print("KERNEL_OK")
</pallas_src>

<mosaic_0001>
module attributes {stable_mosaic.version = 11 : i64} {
  func.func @_smape_kernel(%arg0: i32, %arg1: i32, %arg2: memref<8x256xf32, #tpu.memory_space<vmem>>, %arg3: memref<8x256xf32, #tpu.memory_space<vmem>>, %arg4: memref<1x8x128xf32, #tpu.memory_space<vmem>>, %arg5: memref<8x256xf32, #tpu.memory_space<vmem>>) attributes {dimension_semantics = [#tpu.dimension_semantics<parallel>, #tpu.dimension_semantics<arbitrary>], iteration_bounds = array<i64: 1, 1>, scalar_prefetch = 0 : i64, scratch_operands = 1 : i64, tpu.core_type = #tpu.core_type<tc>, window_params = [{transform_indices = @transform_0, window_bounds = array<i64: 8, 256>}, {transform_indices = @transform_1, window_bounds = array<i64: 8, 256>}, {transform_indices = @transform_2, window_bounds = array<i64: 1, 8, 128>}]} {
    %c0_i32 = arith.constant 0 : i32
    %0 = arith.cmpi eq, %arg1, %c0_i32 : i32
    %1 = arith.extui %0 : i1 to i32
    %c0_i32_0 = arith.constant 0 : i32
    %2 = arith.cmpi ne, %1, %c0_i32_0 : i32
    scf.if %2 {
      %cst = arith.constant 0.000000e+00 : f32
      %17 = vector.broadcast %cst : f32 to vector<8x256xf32>
      %c0_10 = arith.constant 0 : index
      %c0_11 = arith.constant 0 : index
      %18 = vector.load %arg5[%c0_10, %c0_11] : memref<8x256xf32, #tpu.memory_space<vmem>>, vector<8x256xf32>
      tpu.vector_store %arg5[%c0_10, %c0_11], %17 {strides = array<i32>} : memref<8x256xf32, #tpu.memory_space<vmem>>, vector<8x256xf32>,
    } else {
    }
    %c0 = arith.constant 0 : index
    %c0_1 = arith.constant 0 : index
    %3 = vector.load %arg2[%c0, %c0_1] : memref<8x256xf32, #tpu.memory_space<vmem>>, vector<8x256xf32>
    %c0_2 = arith.constant 0 : index
    %c0_3 = arith.constant 0 : index
    %4 = vector.load %arg3[%c0_2, %c0_3] : memref<8x256xf32, #tpu.memory_space<vmem>>, vector<8x256xf32>
    %5 = arith.subf %3, %4 : vector<8x256xf32>
    %6 = math.absf %5 : vector<8x256xf32>
    %7 = math.absf %3 : vector<8x256xf32>
    %8 = math.absf %4 : vector<8x256xf32>
    %9 = arith.addf %7, %8 : vector<8x256xf32>
    %c0_4 = arith.constant 0 : index
    %c0_5 = arith.constant 0 : index
    %10 = vector.load %arg5[%c0_4, %c0_5] : memref<8x256xf32, #tpu.memory_space<vmem>>, vector<8x256xf32>
    %11 = arith.divf %6, %9 : vector<8x256xf32>
    %12 = arith.addf %10, %11 : vector<8x256xf32>
    %c0_6 = arith.constant 0 : index
    %c0_7 = arith.constant 0 : index
    %13 = vector.load %arg5[%c0_6, %c0_7] : memref<8x256xf32, #tpu.memory_space<vmem>>, vector<8x256xf32>
    tpu.vector_store %arg5[%c0_6, %c0_7], %12 {strides = array<i32>} : memref<8x256xf32, #tpu.memory_space<vmem>>, vector<8x256xf32>,
    %c0_i32_8 = arith.constant 0 : i32
    %14 = arith.cmpi eq, %arg1, %c0_i32_8 : i32
    %15 = arith.extui %14 : i1 to i32
    %c0_i32_9 = arith.constant 0 : i32
    %16 = arith.cmpi ne, %15, %c0_i32_9 : i32
    scf.if %16 {
      %c0_10 = arith.constant 0 : index
      %c0_11 = arith.constant 0 : index
      %17 = vector.load %arg5[%c0_10, %c0_11] : memref<8x256xf32, #tpu.memory_space<vmem>>, vector<8x256xf32>
      %18 = vector.shape_cast %17 : vector<8x256xf32> to vector<1x8x256xf32>
      %cst = arith.constant dense<0.000000e+00> : vector<1xf32>
      %19 = vector.multi_reduction <add>, %18, %cst [1, 2] : vector<1x8x256xf32> to vector<1xf32>
      %20 = vector.shape_cast %19 : vector<1xf32> to vector<1x1x1xf32>
      %21 = vector.extract %20[0, 0, 0] : f32 from vector<1x1x1xf32>
      %22 = vector.broadcast %21 : f32 to vector<1x8x128xf32>
      %c0_12 = arith.constant 0 : index
      %c0_13 = arith.constant 0 : index
      %c0_14 = arith.constant 0 : index
      %23 = vector.load %arg4[%c0_12, %c0_13, %c0_14] : memref<1x8x128xf32, #tpu.memory_space<vmem>>, vector<1x8x128xf32>
      tpu.vector_store %arg4[%c0_12, %c0_13, %c0_14], %22 {strides = array<i32>} : memref<1x8x128xf32, #tpu.memory_space<vmem>>, vector<1x8x128xf32>,
    } else {
    }
    return
  }
  func.func @transform_0(%arg0: i32, %arg1: i32) -> (i32, i32) {
    %c0_i32 = arith.constant 0 : i32
    return %arg0, %arg1 : i32, i32
  }
  func.func @transform_1(%arg0: i32, %arg1: i32) -> (i32, i32) {
    %c0_i32 = arith.constant 0 : i32
    return %arg0, %arg1 : i32, i32
  }
  func.func @transform_2(%arg0: i32, %arg1: i32) -> (i32, i32, i32) {
    %c0_i32 = arith.constant 0 : i32
    %c0_i32_0 = arith.constant 0 : i32
    %c0_i32_1 = arith.constant 0 : i32
    return %arg0, %c0_i32, %c0_i32_0 : i32, i32, i32
  }
}

</mosaic_0001>

<bundles_post_ra>
// kernel: tpu_custom_call.1
= control target key start
LH: loop header
LB: loop body
LE: loop exit
PB: predicated region body
PF: predicated region fallthrough
CT: control target
= control target key end

     0   :  { %7 = vsyncpa [#allocation4], 0  ;;  %s201_s0 = inlined_call_operand.hbm [shape: f32[8,256], index: 0, kind: input, shape index: {}]   ;;  %s202_s1 = inlined_call_operand.hbm [shape: f32[8,256], index: 1, kind: input, shape index: {}]   ;;  %s203_s2 = inlined_call_operand.hbm [shape: f32[1,8,128], index: 2, kind: output, shape index: {}]  }
   0x1   :  { %8 = vsyncpa [#allocation7], 0 }
   0x2   :  { %9 = vsyncpa [#allocation5], 0  ;;  %s174_s9 = smov [#allocation3]   ;;  %s175_s11 = smov [#allocation6]  }
   0x3   :  { %s16_s10 = sshll.u32 %s174_s9, 4  ;;  %s26_s12 = sshll.u32 %s175_s11, 4  ;;  %s17_s10 = int_to_ptr.vmem [resolvable:$true] %s16_s10  ;;  %s27_s12 = int_to_ptr.vmem [resolvable:$true] %s26_s12 }
   0x4   :  { %s116_s13 = scalar_lea.vmem %s17_s10, 256  ;;  %p121_p1 = scmp.lt.s32.totalorder %s17_s10, %s17_s10 }
   0x5   :  { %p117_p0 = scmp.ne.s32.totalorder %s17_s10, %s116_s13  ;;  %p122_p2 = scmp.lt.s32.totalorder %s116_s13, %s116_s13 }
   0x7   :  { %p123_p3 = por %p122_p2, %p121_p1 }
   0x9   :  { %p124_p4 = pnand %p123_p3, %p117_p0 }
   0xb   :  { %127 = shalt.err (!%p124_p4)
}
   0xc   :  { %19 = dma.hbm_to_vmem [thread:$0]  %s201_s0, 256, %s17_s10, [#allocation4]  }
   0xd   :  { %s136_s16 = scalar_lea.vmem %s27_s12, 256  ;;  %p141_p6 = scmp.lt.s32.totalorder %s27_s12, %s27_s12 }
   0xe   :  { %p137_p5 = scmp.ne.s32.totalorder %s27_s12, %s136_s16  ;;  %p142_p7 = scmp.lt.s32.totalorder %s136_s16, %s136_s16 }
  0x10   :  { %p143_p8 = por %p142_p7, %p141_p6 }
  0x12   :  { %p144_p9 = pnand %p143_p8, %p137_p5 }
  0x14   :  { %147 = shalt.err (!%p144_p9)
}
  0x15   :  { %29 = dma.hbm_to_vmem [thread:$0]  %s202_s1, 256, %s27_s12, [#allocation7]  }
  0x16   :  { %168 = dma.done.wait [#allocation4], 256  }
  0x17   :  { %169 = vsyncadd [#allocation4], 4294967040 }
  0x18   :  { %170 = dma.done.wait [#allocation7], 256  }
  0x19   :  { %171 = vsyncadd [#allocation7], 4294967040  ;;  %v42_v0 = vld [vmem:[#allocation3] sm:$0xff]  ;;  %v43_v1 = vld [vmem:[#allocation3 + $0x8] sm:$0xff]  ;;  %s176_s0 = smov [#allocation8]  }
  0x1a   :  { %v44_v2 = vld [vmem:[#allocation6] sm:$0xff]  ;;  %v45_v3 = vld [vmem:[#allocation6 + $0x8] sm:$0xff]  ;;  %v50_v4 = vand.u32 2147483647, %v42_v0  ;;  %v51_v5 = vand.u32 2147483647, %v43_v1 }
  0x1b   :  { %v52_v6 = vand.u32 2147483647, %v44_v2  ;;  %v53_v7 = vand.u32 2147483647, %v45_v3  ;;  %v46_v10 = vsub.f32 %v42_v0, %v44_v2  ;;  %v47_v11 = vsub.f32 %v43_v1, %v45_v3  ;;  %s89_s1 = sshll.u32 %s176_s0, 4  ;;  %s90_s1 = int_to_ptr.vmem [resolvable:$true] %s89_s1 }
  0x1c   :  { %s148_s20 = scalar_lea.vmem %s90_s1, 128  ;;  %p153_p11 = scmp.lt.s32.totalorder %s90_s1, %s90_s1 }
  0x1d   :  { %v54_v8 = vadd.f32 %v52_v6, %v50_v4  ;;  %v55_v9 = vadd.f32 %v53_v7, %v51_v5  ;;  %v48_v12 = vand.u32 2147483647, %v46_v10  ;;  %v49_v13 = vand.u32 2147483647, %v47_v11  ;;  %p149_p10 = scmp.ne.s32.totalorder %s90_s1, %s148_s20  ;;  %p154_p12 = scmp.lt.s32.totalorder %s148_s20, %s148_s20 }
  0x1f   :  { %104 = vrcp.f32 %v54_v8  ;;  %p155_p13 = por %p154_p12, %p153_p11 }
  0x20   :  { %106 = vrcp.f32 %v55_v9 }
  0x21   :  { %p156_p0 = pnand %p155_p13, %p149_p10 }
  0x2c   :  { %v105_v14 = vpop.eup %104 }
  0x2d   :  { %v107_v15 = vpop.eup %106  ;;  %v59_v16 = vmul.f32 %v105_v14, %v48_v12 }
  0x2e   :  { %v61_v17 = vmul.f32 %v107_v15, %v49_v13 }
  0x30   :  { %v71_v18 = vadd.f32 %v61_v17, %v59_v16 }
  0x32   :  { %72 = vadd.xlane.f32.xlu0 %v71_v18 }
  0xbb   :  { %v73_v19 = vpop.xlane.xlu0 %72 }
  0xbc   :  { %v74_v20 = vrot.slane %v73_v19, 4 }
  0xbe   :  { %v75_v21 = vadd.f32 %v74_v20, %v73_v19 }
  0xc0   :  { %v76_v22 = vrot.slane %v75_v21, 2 }
  0xc2   :  { %v77_v23 = vadd.f32 %v76_v22, %v75_v21 }
  0xc4   :  { %v78_v24 = vrot.slane %v77_v23, 1 }
  0xc6   :  { %v79_v25 = vadd.f32 %v78_v24, %v77_v23 }
  0xc8   :  { %99 = vpush %v79_v25 }
  0xf9   :  { %s100_s19 = spop %99 }
  0xfa   :  { %v81_v26 = vstv %s100_s19 }
  0xfb   :  { %82 = vst [vmem:[#allocation8] sm:$0xff] %v81_v26 }
  0xfc   :  { %159 = shalt.err (!%p156_p0)
}
  0xfd   :  { %92 = dma.vmem_to_hbm [thread:$0]  %s90_s1, 128, %s203_s2, [#allocation5]  }
  0xfe   :  { %172 = dma.done.wait [#allocation5], 128  }
  0xff   :  { %173 = vsyncadd [#allocation5], 4294967168 }
 0x100   :  { %96 = vsyncpa [#allocation4], 1 }
 0x101   :  { %97 = vsyncpa [#allocation7], 1 }
 0x102   :  { %98 = vsyncpa [#allocation5], 1 }

</bundles_post_ra>
